<compile_context>
chip_gen: v7x
topology: tpu7x:2x2x1
jax: 0.10.0
libtpu: 0.0.40
codegen_flags: <defaults>
</compile_context>

<pallas_src>
import jax
import jax.numpy as jnp
from jax import lax
from jax.experimental import pallas as pl
from jax.experimental.pallas import tpu as pltpu


def _round_up(a: int, b: int) -> int:
    return (a + b - 1) // b * b


def _vmem_config():
    """Returns (total x-buffer budget, scoped vmem limit) in bytes, per chip gen."""
    cap = None
    try:
        info = pltpu.get_tpu_info()
        for name in ("vmem_capacity_bytes", "vmem_size_bytes", "vmem_bytes"):
            cap = getattr(info, name, None)
            if cap:
                break
    except Exception:
        cap = None
    if not cap:
        cap = 64 * 1024 * 1024                      # unknown -> assume v7x (64 MiB)
    if cap >= 100 * 1024 * 1024:                    # v5e / v6e: 128 MiB physical VMEM
        return 48 * 1024 * 1024, 96 * 1024 * 1024
    return 20 * 1024 * 1024, 32 * 1024 * 1024       # v7x: 64 MiB physical VMEM


def _choose_tiling(N, D, requested_tile_n, forced_tile_d, x_budget_bytes, n_bufs):
    """Pick (tile_n, tile_d, num_k) under the lane-padding-aware VMEM budget."""
    d_pad = _round_up(D, 128)                       # real VMEM footprint of the D axis
    n_pad128 = _round_up(max(N, 1), 128)

    if forced_tile_d is not None and forced_tile_d < D:
        tile_d = max(128, _round_up(forced_tile_d, 128))
    elif n_bufs * 4 * d_pad * 128 <= x_budget_bytes:
        tile_d = D                                   # whole feature dim in one block
    else:
        # K-tiling: largest lane-aligned slice such that a 128-row tile still fits.
        tile_d = max(128, (x_budget_bytes // (n_bufs * 4 * 128)) // 128 * 128)

    if tile_d == D:
        block_d, num_k = d_pad, 1
    else:
        block_d, num_k = tile_d, pl.cdiv(D, tile_d)

    max_rows = max(128, (x_budget_bytes // (n_bufs * 4 * block_d)) // 128 * 128)
    tile_n = min(_round_up(requested_tile_n, 128), max_rows, n_pad128)
    if n_pad128 >= 256:                              # keep >= 2 row tiles for v7x's 2 TCs
        tile_n = min(tile_n, _round_up((n_pad128 + 1) // 2, 128))
    tile_n = max(128, tile_n)
    return tile_n, tile_d, num_k


def _single_k_kernel(b_ref, x_ref, w_ref, o_ref):
    # b_ref: (1,) f32 SMEM; x_ref: (TILE_N, D); w_ref: (1, D); o_ref: (1, TILE_N).
    y = lax.dot_general(
        w_ref[...], x_ref[...],
        dimension_numbers=(((1,), (1,)), ((), ())),
        preferred_element_type=jnp.float32,
    )
    o_ref[...] = (y + b_ref[0]).astype(o_ref.dtype)


def _make_multi_k_kernel(num_k, tile_d, d_true, needs_mask):
    def kernel(b_ref, x_ref, w_ref, o_ref):
        k = pl.program_id(1)

        @pl.when(k == 0)
        def _():
            o_ref[...] = jnp.zeros_like(o_ref)

        x = x_ref[...]
        if needs_mask:
            # Ragged last K slice: zero out-of-range feature columns (W is
            # zero-padded, so masked x avoids garbage*0 NaN propagation).
            col = k * tile_d + lax.broadcasted_iota(jnp.int32, (1, tile_d), 1)
            x = jnp.where(col < d_true, x, 0.0)

        o_ref[...] += lax.dot_general(
            w_ref[...], x,
            dimension_numbers=(((1,), (1,)), ((), ())),
            preferred_element_type=jnp.float32,
        ).astype(o_ref.dtype)

        @pl.when(k == num_k - 1)
        def _():
            o_ref[...] += b_ref[0]

    return kernel


def linear_regression_forward(x, weights, bias, *, tile_n: int = 2048, tile_d=None):
    """x: (N, D) f32, weights: (D, 1) f32, bias: (1,) f32 -> (N, 1) f32."""
    N, D = x.shape
    assert weights.shape == (D, 1)
    assert bias.shape == (1,)

    x = x.astype(jnp.float32)
    weights = weights.astype(jnp.float32)
    bias = bias.astype(jnp.float32)

    n_bufs = 3                                        # pl.Buffered(3) on streamed x
    x_budget, vmem_limit = _vmem_config()
    tn, td, num_k = _choose_tiling(N, D, tile_n, tile_d, x_budget, n_bufs)

    num_n = pl.cdiv(N, tn)
    n_out = num_n * tn                                # tiny lane-dense output slab

    if num_k == 1:
        block_d = D
        w_arr = weights.reshape(1, D)
        kernel = _single_k_kernel
    else:
        block_d = td
        k_cols = num_k * td
        w_arr = jnp.pad(weights.reshape(1, D), ((0, 0), (0, k_cols - D)))
        kernel = _make_multi_k_kernel(num_k, td, D, needs_mask=(D % td) != 0)

    # Sanity: double/triple-buffered x tiles (+ resident W + output) fit the limit.
    assert n_bufs * tn * _round_up(block_d, 128) * 4 + 4 * _round_up(block_d, 128) \
        + 8 * n_out <= vmem_limit

    def run(buffered):
        x_kwargs = {"pipeline_mode": pl.Buffered(n_bufs)} if buffered else {}
        grid_spec = pltpu.PrefetchScalarGridSpec(
            num_scalar_prefetch=0,
            grid=(num_n, num_k),
            in_specs=[
                pl.BlockSpec(memory_space=pltpu.SMEM),                      # bias
                pl.BlockSpec((tn, block_d), lambda i, k: (i, k), **x_kwargs),  # x
                pl.BlockSpec((1, block_d), lambda i, k: (0, k)),            # W row
            ],
            out_specs=pl.BlockSpec((1, tn), lambda i, k: (0, i)),           # lane-dense
        )
        return pl.pallas_call(
            kernel,
            out_shape=jax.ShapeDtypeStruct((1, n_out), jnp.float32),
            grid_spec=grid_spec,
            compiler_params=pltpu.CompilerParams(
                dimension_semantics=("parallel", "arbitrary"),
                vmem_limit_bytes=vmem_limit,
            ),
            cost_estimate=pl.CostEstimate(
                flops=2 * N * D,
                transcendentals=0,
                bytes_accessed=4 * (N * D + D + N),
            ),
        )(bias, x, w_arr)

    try:
        out_row = run(True)
    except Exception:
        # Fallback to default double-buffering if Buffered(3) is rejected.
        out_row = run(False)

    # Free layout plumbing back to the PyTorch-shaped (N, 1) output.
    return out_row.reshape(n_out, 1)[:N]


if __name__ == "__main__":
    key = jax.random.PRNGKey(0)
    k_x, k_w, k_b = jax.random.split(key, 3)

    # Small shapes consistent with the module: batch=8, input_dim=32.
    N, D = 8, 32
    x = jax.random.normal(k_x, (N, D), dtype=jnp.float32)
    weights = jax.random.normal(k_w, (D, 1), dtype=jnp.float32)
    bias = jax.random.normal(k_b, (1,), dtype=jnp.float32)

    y = linear_regression_forward(x, weights, bias)
    jax.block_until_ready(y)
    assert y.shape == (N, 1)
    assert jnp.allclose(y, x @ weights + bias, atol=1e-5, rtol=1e-5)

    # Multi-row-tile path with an unpadded ragged last N block (no jnp.pad of x).
    N2 = 300
    x2 = jax.random.normal(jax.random.PRNGKey(1), (N2, D), dtype=jnp.float32)
    y2 = linear_regression_forward(x2, weights, bias, tile_n=128)
    jax.block_until_ready(y2)
    assert y2.shape == (N2, 1)
    assert jnp.allclose(y2, x2 @ weights + bias, atol=1e-5, rtol=1e-5)

    # K-tiled (large-D) path exercised at small scale: ragged last feature slice
    # (masked in-kernel) and ragged N block simultaneously.
    N3, D3 = 40, 300
    x3 = jax.random.normal(jax.random.PRNGKey(2), (N3, D3), dtype=jnp.float32)
    w3 = jax.random.normal(jax.random.PRNGKey(3), (D3, 1), dtype=jnp.float32)
    y3 = linear_regression_forward(x3, w3, bias, tile_n=128, tile_d=128)
    jax.block_until_ready(y3)
    assert y3.shape == (N3, 1)
    assert jnp.allclose(y3, x3 @ w3 + bias, atol=2e-4, rtol=2e-4)

    # TODO(synk): mse_loss is a training-time scalar reduction, not part of forward; not kernelized.
    print("KERNEL_OK")
</pallas_src>

<mosaic_0001>
module attributes {stable_mosaic.version = 11 : i64} {
  func.func @_single_k_kernel(%arg0: i32, %arg1: i32, %arg2: memref<1xf32, #tpu.memory_space<smem>>, %arg3: memref<128x32xf32, #tpu.memory_space<vmem>>, %arg4: memref<1x32xf32, #tpu.memory_space<vmem>>, %arg5: memref<1x128xf32, #tpu.memory_space<vmem>>) attributes {dimension_semantics = [#tpu.dimension_semantics<parallel>, #tpu.dimension_semantics<arbitrary>], iteration_bounds = array<i64: 1, 1>, scalar_prefetch = 0 : i64, scratch_operands = 0 : i64, tpu.core_type = #tpu.core_type<tc>, window_params = [{transform_indices = @transform_0, window_bounds = array<i64: 1>}, {transform_indices = @transform_1, window_bounds = array<i64: 128, 32>}, {transform_indices = @transform_2, window_bounds = array<i64: 1, 32>}, {transform_indices = @transform_3, window_bounds = array<i64: 1, 128>}]} {
    %c0 = arith.constant 0 : index
    %c0_0 = arith.constant 0 : index
    %0 = vector.load %arg4[%c0, %c0_0] : memref<1x32xf32, #tpu.memory_space<vmem>>, vector<1x32xf32>
    %c0_1 = arith.constant 0 : index
    %c0_2 = arith.constant 0 : index
    %1 = vector.load %arg3[%c0_1, %c0_2] : memref<128x32xf32, #tpu.memory_space<vmem>>, vector<128x32xf32>
    %cst = arith.constant dense<0.000000e+00> : vector<1x128xf32>
    %2 = tpu.matmul %0, %1, %cst {dimension_numbers = #tpu.dot_dimension_numbers<[1], [1], [0], [0], [0, 0, 1, 0], [], []>} : vector<1x32xf32>, vector<128x32xf32>, vector<1x128xf32> -> vector<1x128xf32>
    %c0_3 = arith.constant 0 : index
    %3 = memref.load %arg2[%c0_3] : memref<1xf32, #tpu.memory_space<smem>>
    %4 = vector.broadcast %3 : f32 to vector<1x128xf32>
    %5 = arith.addf %2, %4 : vector<1x128xf32>
    %c0_4 = arith.constant 0 : index
    %c0_5 = arith.constant 0 : index
    %6 = vector.load %arg5[%c0_4, %c0_5] : memref<1x128xf32, #tpu.memory_space<vmem>>, vector<1x128xf32>
    tpu.vector_store %arg5[%c0_4, %c0_5], %5 {strides = array<i32>} : memref<1x128xf32, #tpu.memory_space<vmem>>, vector<1x128xf32>,
    return
  }
  func.func @transform_0(%arg0: i32, %arg1: i32) -> i32 {
    %c0_i32 = arith.constant 0 : i32
    %c0_i32_0 = arith.constant 0 : i32
    return %c0_i32 : i32
  }
  func.func @transform_1(%arg0: i32, %arg1: i32) -> (i32, i32) {
    %c0_i32 = arith.constant 0 : i32
    return %arg0, %arg1 : i32, i32
  }
  func.func @transform_2(%arg0: i32, %arg1: i32) -> (i32, i32) {
    %c0_i32 = arith.constant 0 : i32
    %c0_i32_0 = arith.constant 0 : i32
    return %c0_i32, %arg1 : i32, i32
  }
  func.func @transform_3(%arg0: i32, %arg1: i32) -> (i32, i32) {
    %c0_i32 = arith.constant 0 : i32
    %c0_i32_0 = arith.constant 0 : i32
    return %c0_i32, %arg0 : i32, i32
  }
}

</mosaic_0001>

<bundles_post_ra>
// kernel: tpu_custom_call.1
= control target key start
LH: loop header
LB: loop body
LE: loop exit
PB: predicated region body
PF: predicated region fallthrough
CT: control target
= control target key end

     0   :  { %9 = vsyncpa [#allocation4], 0  ;;  %s423_s0 = inlined_call_operand.<no memory space> [shape: f32[1], index: 0, kind: input, shape index: {}]   ;;  %s424_s1 = inlined_call_operand.hbm [shape: f32[8,32], index: 1, kind: input, shape index: {}]   ;;  %s425_s2 = inlined_call_operand.vmem [shape: f32[1,32], index: 2, kind: input, shape index: {}]   ;;  %s426_s3 = inlined_call_operand.hbm [shape: f32[1,128], index: 3, kind: output, shape index: {}]  }
   0x1   :  { %10 = vsyncpa [#allocation5], 0 }
   0x2   :  { %17 = vsyncadd [#allocation4], 1920  ;;  %s343_s12 = smov [#allocation3]   ;;  %s295_s16 = scalar_lea.hbm %s424_s1, 128 }
   0x3   :  { %s18_s13 = sshll.u32 %s343_s12, 4  ;;  %p296_p0 = scmp.ne.s32.totalorder %s424_s1, %s295_s16  ;;  %s19_s13 = int_to_ptr.vmem [resolvable:$true] %s18_s13 }
   0x4   :  { %p299_p1 = scmp.lt.u32.totalorder %s295_s16, %s424_s1 }
   0x6   :  { %p301_p2 = pnand %p299_p1, %p296_p0 }
   0x8   :  { %304 = shalt.err (!%p301_p2)
}
   0x9   :  { %s305_s21 = scalar_lea.vmem %s19_s13, 128  ;;  %s309_s22 = scalar_lea.vmem %s19_s13, 2048 }
   0xa   :  { %p306_p3 = scmp.ne.s32.totalorder %s19_s13, %s305_s21  ;;  %p310_p4 = scmp.lt.s32.totalorder %s19_s13, %s19_s13 }
   0xb   :  { %p311_p5 = scmp.lt.s32.totalorder %s309_s22, %s305_s21 }
   0xd   :  { %p312_p6 = por %p311_p5, %p310_p4 }
   0xf   :  { %p313_p7 = pnand %p312_p6, %p306_p3 }
  0x11   :  { %316 = shalt.err (!%p313_p7)
}
  0x12   :  { %s344_s23 = smov 128   ;;  %s345_s24 = smov 8  }
  0x13   :  { %24 = dma.hbm_to_vmem [thread:$0]  %s424_s1, 128, %s19_s13, [#allocation4], %s344_s23, %s344_s23, %s345_s24  }
  0x14   :  { %339 = dma.done.wait [#allocation4], 2048  }
  0x15   :  { %340 = vsyncadd [#allocation4], 4294965248  ;;  %v346_v0 = vmov 0.0|0.0   ;;  %vm347_vm0 = vmmov 0   ;;  %v348_v1 = vmov 0.0   ;;  %vm49_vm1 = vcmask 261120  }
  0x16   :  { %256 = vmatprep.subr.bf16.mxu0 %v346_v0  ;;  %253 = vmatprep.mubr.msk.f32.mxu0 %vm347_vm0, %v348_v1  ;;  %v31_v2 = vld [vmem:[#allocation3] sm:$0xff]  ;;  %v32_v3 = vld [vmem:[#allocation3 + $0x8] sm:$0xff]  ;;  %vm384_vm2 = vmpackc.low %vm49_vm1, %vm49_vm1  ;;  %v48_v28 = vstv %s423_s0  ;;  %s349_s30 = smov [#allocation6]  }
  0x17   :  { %v257_v5 = vpack.c.bf16 %v32_v3, %v31_v2  ;;  %v33_v6 = vld [vmem:[#allocation3 + $0x10] sm:$0xff]  ;;  %v34_v7 = vld [vmem:[#allocation3 + $0x18] sm:$0xff]  ;;  %v35_v9 = vld [vmem:[#allocation3 + $0x20] sm:$0xff]  ;;  %s178_s4 = sshll.u32 %s349_s30, 4  ;;  %s179_s4 = int_to_ptr.vmem [resolvable:$true] %s178_s4 }
  0x18   :  { %v261_v8 = vpack.c.bf16 %v34_v7, %v33_v6  ;;  %v36_v10 = vld [vmem:[#allocation3 + $0x28] sm:$0xff]  ;;  %v37_v12 = vld [vmem:[#allocation3 + $0x30] sm:$0xff]  ;;  %v38_v13 = vld [vmem:[#allocation3 + $0x38] sm:$0xff]  ;;  %s317_s5 = scalar_lea.vmem %s179_s4, 16  ;;  %s321_s6 = scalar_lea.vmem %s179_s4, 32 }
  0x19   :  { %259 = vmatpush3.bf16.xpose.msk.msra.mxu0 %vm384_vm2, %v257_v5  ;;  %v265_v11 = vpack.c.bf16 %v36_v10, %v35_v9  ;;  %v269_v14 = vpack.c.bf16 %v38_v13, %v37_v12  ;;  %v39_v15 = vld [vmem:[#allocation3 + $0x40] sm:$0xff]  ;;  %v40_v16 = vld [vmem:[#allocation3 + $0x48] sm:$0xff]  ;;  %v41_v18 = vld [vmem:[#allocation3 + $0x50] sm:$0xff]  ;;  %p318_p8 = scmp.ne.s32.totalorder %s179_s4, %s317_s5  ;;  %p322_p9 = scmp.lt.s32.totalorder %s179_s4, %s179_s4 }
  0x1a   :  { %260 = vmatprep.subr.bf16.mxu0 %v346_v0  ;;  %v273_v17 = vpack.c.bf16 %v40_v16, %v39_v15  ;;  %v42_v19 = vld [vmem:[#allocation3 + $0x58] sm:$0xff]  ;;  %v43_v21 = vld [vmem:[#allocation3 + $0x60] sm:$0xff]  ;;  %v44_v22 = vld [vmem:[#allocation3 + $0x68] sm:$0xff]  ;;  %p323_p10 = scmp.lt.s32.totalorder %s321_s6, %s317_s5 }
  0x1b   :  { %v277_v20 = vpack.c.bf16 %v42_v19, %v41_v18  ;;  %v281_v23 = vpack.c.bf16 %v44_v22, %v43_v21  ;;  %v45_v24 = vld [vmem:[#allocation3 + $0x70] sm:$0xff]  ;;  %v46_v25 = vld [vmem:[#allocation3 + $0x78] sm:$0xff]  ;;  %v30_v27 = vld [vmem:[%s425_s2] sm:$0x1] }
  0x1c   :  { %v285_v26 = vpack.c.bf16 %v46_v25, %v45_v24  ;;  %p324_p11 = por %p323_p10, %p322_p9 }
  0x1e   :  { %p325_p12 = pnand %p324_p11, %p318_p8 }
  0x21   :  { %263 = vmatpush3.bf16.xpose.msk.msra.mxu0 %vm384_vm2, %v261_v8 }
  0x22   :  { %264 = vmatprep.subr.bf16.mxu0 %v346_v0 }
  0x29   :  { %267 = vmatpush3.bf16.xpose.msk.msra.mxu0 %vm384_vm2, %v265_v11 }
  0x2a   :  { %268 = vmatprep.subr.bf16.mxu0 %v346_v0 }
  0x31   :  { %271 = vmatpush3.bf16.xpose.msk.msra.mxu0 %vm384_vm2, %v269_v14 }
  0x32   :  { %272 = vmatprep.subr.bf16.mxu0 %v346_v0 }
  0x39   :  { %275 = vmatpush3.bf16.xpose.msk.msra.mxu0 %vm384_vm2, %v273_v17 }
  0x3a   :  { %276 = vmatprep.subr.bf16.mxu0 %v346_v0 }
  0x41   :  { %279 = vmatpush3.bf16.xpose.msk.msra.mxu0 %vm384_vm2, %v277_v20 }
  0x42   :  { %280 = vmatprep.subr.bf16.mxu0 %v346_v0 }
  0x49   :  { %283 = vmatpush3.bf16.xpose.msk.msra.mxu0 %vm384_vm2, %v281_v23 }
  0x4a   :  { %284 = vmatprep.subr.bf16.mxu0 %v346_v0 }
  0x51   :  { %287 = vmatpush3.bf16.xpose.msk.msra.mxu0 %vm384_vm2, %v285_v26 }
  0x58   :  { %254 = vmatmul.mubr.msk.f32.vlgmr.msra.gmra.mrb[0].mxu0 %vm49_vm1, %v30_v27 }
 0x12b   :  { %v167_v29 = vpop.f32.mrb[0].mxu0 }
 0x12c   :  { %v168_v30 = vadd.f32 %v167_v29, %v48_v28  ;;  %v255_v31 = vpop.f32.mrb[1].mxu0 }
 0x12e   :  { %171 = vst [vmem:[#allocation6] sm:$0x1] %v168_v30 }
 0x12f   :  { %328 = shalt.err (!%p325_p12)
}
 0x130   :  { %s329_s8 = scalar_lea.hbm %s426_s3, 16 }
 0x131   :  { %p330_p13 = scmp.ne.s32.totalorder %s426_s3, %s329_s8  ;;  %p333_p0 = scmp.lt.u32.totalorder %s329_s8, %s426_s3 }
 0x133   :  { %p335_p1 = pnand %p333_p0, %p330_p13 }
 0x135   :  { %338 = shalt.err (!%p335_p1)
}
 0x136   :  { %181 = dma.vmem_to_hbm [thread:$0]  %s179_s4, 16, %s426_s3, [#allocation5]  }
 0x137   :  { %341 = dma.done.wait [#allocation5], 16  }
 0x138   :  { %342 = vsyncadd [#allocation5], 4294967280 }
 0x139   :  { %185 = vsyncpa [#allocation4], 1 }
 0x13a   :  { %186 = vsyncpa [#allocation5], 1 }

</bundles_post_ra>
